<compile_context>
chip_gen: v6e
topology: v6e:2x2x1
jax: 0.10.0
libtpu: 0.0.40
codegen_flags: <defaults>
</compile_context>

<pallas_src>
import jax
import jax.numpy as jnp
from jax.experimental import pallas as pl
from jax.experimental.pallas import tpu as pltpu

_SUBLANE = 8
_MAX_BLOCK_M = 2048  # 2048 x 64 f32 double-buffered x/out tiles ~= 2 MiB total, far under VMEM


def _round_up(x, m):
    return ((x + m - 1) // m) * m


def _linear_bias_kernel(x_ref, w_ref, b_ref, o_ref):
    # x_ref: (block_m, in_dim)   streamed per grid step (double-buffered)
    # w_ref: (in_dim, out_dim)   VMEM-resident across the grid (single-buffered)
    # b_ref: (1, out_dim)        VMEM-resident across the grid (single-buffered)
    acc = jnp.dot(x_ref[...], w_ref[...], preferred_element_type=jnp.float32)
    o_ref[...] = (acc + b_ref[...]).astype(o_ref.dtype)


def prepare_layer3_params(w3, b3, compute_dtype=None):
    """One-time parameter prep (hoisted out of the per-call path).

    Args:
      w3: (out_dim, in_dim) float32, PyTorch nn.Linear layout.
      b3: (out_dim,)        float32.
      compute_dtype: optional dtype (e.g. jnp.bfloat16) for the weight.
    Returns:
      w3t:   (in_dim, out_dim) weight, ready for x @ w3t.
      b3row: (1, out_dim) float32 bias row (bias add stays in f32).
    """
    w3t = jnp.asarray(w3).T
    if compute_dtype is not None:
        w3t = w3t.astype(compute_dtype)
    b3row = jnp.asarray(b3, jnp.float32).reshape(1, -1)
    return w3t, b3row


def _pick_block_m(n, max_block_m):
    if n <= _SUBLANE:
        return n  # single block equal to the full batch dim (allowed by the (8,128) rule)
    # Balanced, sublane-aligned tiles; force >=2 grid steps so v7x can use both TCs.
    tiles = max(pl.cdiv(n, max_block_m), 2)
    return _round_up(pl.cdiv(n, tiles), _SUBLANE)


def prediction_mlp_forward(x, w3t, b3row, *, max_block_m=_MAX_BLOCK_M, compute_dtype=None):
    """forward() of prediction_MLP: layer3(x) = x @ W3^T + b3.

    Args:
      x:     (N, in_dim) float32.
      w3t:   (in_dim, out_dim) pre-transposed weight from prepare_layer3_params.
      b3row: (1, out_dim) float32 bias row from prepare_layer3_params.
    Returns:
      (N, out_dim) float32.
    """
    if compute_dtype is not None:
        x = x.astype(compute_dtype)
        w3t = w3t.astype(compute_dtype)

    N, in_dim = x.shape
    out_dim = w3t.shape[1]

    block_m = _pick_block_m(N, max_block_m)
    grid = (pl.cdiv(N, block_m),)

    # Scheduler hint from true (unpadded) dims and actual dtypes.
    cost = pl.CostEstimate(
        flops=2 * N * in_dim * out_dim,
        transcendentals=0,
        bytes_accessed=(
            x.size * x.dtype.itemsize
            + w3t.size * w3t.dtype.itemsize
            + b3row.size * b3row.dtype.itemsize
            + N * out_dim * 4  # f32 output
        ),
    )

    return pl.pallas_call(
        _linear_bias_kernel,
        out_shape=jax.ShapeDtypeStruct((N, out_dim), jnp.float32),
        grid_spec=pl.GridSpec(
            grid=grid,
            in_specs=[
                # Streamed x tiles (Pallas default double-buffering overlaps DMA with MXU).
                pl.BlockSpec((block_m, in_dim), lambda i: (i, 0)),
                # Resident weight / bias: constant index_map, single buffer (no 2x VMEM).
                pl.BlockSpec((in_dim, out_dim), lambda i: (0, 0),
                             pipeline_mode=pl.Buffered(1)),
                pl.BlockSpec((1, out_dim), lambda i: (0, 0),
                             pipeline_mode=pl.Buffered(1)),
            ],
            out_specs=pl.BlockSpec((block_m, out_dim), lambda i: (i, 0)),
        ),
        compiler_params=pltpu.CompilerParams(
            # Batch tiles are independent -> megacore-shardable on v7x.
            dimension_semantics=("parallel",),
        ),
        cost_estimate=cost,
    )(x, w3t, b3row)


def init_params(key, in_dim=64, hidden_dim=64, out_dim=64):
    """Deterministic init mirroring the module's __init__ shapes
    (PyTorch-style uniform(-1/sqrt(fan_in), 1/sqrt(fan_in)))."""
    keys = jax.random.split(key, 6)

    def lin_init(kw, kb, fan_in, fan_out):
        bound = 1.0 / jnp.sqrt(jnp.float32(fan_in))
        w = jax.random.uniform(kw, (fan_out, fan_in), jnp.float32, -bound, bound)
        b = jax.random.uniform(kb, (fan_out,), jnp.float32, -bound, bound)
        return w, b

    # layer1 (Linear + BatchNorm1d + ReLU) and layer2 are unused by forward(); shapes only.
    w1, b1 = lin_init(keys[0], keys[1], in_dim, hidden_dim)
    bn_gamma = jnp.ones((hidden_dim,), jnp.float32)
    bn_beta = jnp.zeros((hidden_dim,), jnp.float32)
    w2, b2 = lin_init(keys[2], keys[3], hidden_dim, out_dim)
    # layer3: the only layer forward() uses.
    w3, b3 = lin_init(keys[4], keys[5], in_dim, out_dim)

    return {
        "layer1": {"w": w1, "b": b1, "bn_gamma": bn_gamma, "bn_beta": bn_beta},
        "layer2": {"w": w2, "b": b2},
        "layer3": {"w": w3, "b": b3},
    }


if __name__ == "__main__":
    key = jax.random.PRNGKey(0)
    k_params, k_x1, k_x2 = jax.random.split(key, 3)

    in_dim, hidden_dim, out_dim = 64, 64, 64
    params = init_params(k_params, in_dim, hidden_dim, out_dim)
    w3 = params["layer3"]["w"]  # (out_dim, in_dim), PyTorch layout
    b3 = params["layer3"]["b"]

    # One-time param prep (hoisted out of the forward path).
    w3t, b3row = prepare_layer3_params(w3, b3)

    # Case 1: small batch, single tile.
    x1 = jax.random.normal(k_x1, (8, in_dim), jnp.float32)
    out1 = jax.block_until_ready(prediction_mlp_forward(x1, w3t, b3row))
    ref1 = x1 @ w3.T + b3
    assert out1.shape == (8, out_dim)
    assert jnp.allclose(out1, ref1, atol=1e-5, rtol=1e-5)

    # Case 2: non-divisible batch -> 2 grid steps with a partial last tile.
    x2 = jax.random.normal(k_x2, (20, in_dim), jnp.float32)
    out2 = jax.block_until_ready(prediction_mlp_forward(x2, w3t, b3row))
    ref2 = x2 @ w3.T + b3
    assert out2.shape == (20, out_dim)
    assert jnp.allclose(out2, ref2, atol=1e-5, rtol=1e-5)

    # Case 3: optional bf16 compute path (halves HBM read traffic; f32 accumulate/output).
    out3 = jax.block_until_ready(
        prediction_mlp_forward(x2, w3t, b3row, compute_dtype=jnp.bfloat16)
    )
    assert jnp.allclose(out3, ref2, atol=5e-2, rtol=5e-2)

    print("KERNEL_OK")
</pallas_src>

<mosaic_0001>
module attributes {stable_mosaic.version = 11 : i64} {
  func.func @_linear_bias_kernel(%arg0: i32, %arg1: memref<8x64xf32, #tpu.memory_space<vmem>>, %arg2: memref<64x64xf32, #tpu.memory_space<vmem>>, %arg3: memref<1x64xf32, #tpu.memory_space<vmem>>, %arg4: memref<8x64xf32, #tpu.memory_space<vmem>>) attributes {dimension_semantics = [#tpu.dimension_semantics<parallel>], iteration_bounds = array<i64: 1>, scalar_prefetch = 0 : i64, scratch_operands = 0 : i64, tpu.core_type = #tpu.core_type<tc>, window_params = [{transform_indices = @transform_0, window_bounds = array<i64: 8, 64>}, {pipeline_mode = #tpu.pipeline_mode<synchronous>, transform_indices = @transform_1, window_bounds = array<i64: 64, 64>}, {pipeline_mode = #tpu.pipeline_mode<synchronous>, transform_indices = @transform_2, window_bounds = array<i64: 1, 64>}, {transform_indices = @transform_3, window_bounds = array<i64: 8, 64>}]} {
    %c0 = arith.constant 0 : index
    %c0_0 = arith.constant 0 : index
    %0 = vector.load %arg1[%c0, %c0_0] : memref<8x64xf32, #tpu.memory_space<vmem>>, vector<8x64xf32>
    %c0_1 = arith.constant 0 : index
    %c0_2 = arith.constant 0 : index
    %1 = vector.load %arg2[%c0_1, %c0_2] : memref<64x64xf32, #tpu.memory_space<vmem>>, vector<64x64xf32>
    %cst = arith.constant dense<0.000000e+00> : vector<8x64xf32>
    %2 = tpu.matmul %0, %1, %cst {dimension_numbers = #tpu.dot_dimension_numbers<[1], [0], [0], [1], [0, 0, 1, 1], [], []>} : vector<8x64xf32>, vector<64x64xf32>, vector<8x64xf32> -> vector<8x64xf32>
    %c0_3 = arith.constant 0 : index
    %c0_4 = arith.constant 0 : index
    %3 = vector.load %arg3[%c0_3, %c0_4] : memref<1x64xf32, #tpu.memory_space<vmem>>, vector<1x64xf32>
    %4 = vector.broadcast %3 : vector<1x64xf32> to vector<8x64xf32>
    %5 = arith.addf %2, %4 : vector<8x64xf32>
    %c0_5 = arith.constant 0 : index
    %c0_6 = arith.constant 0 : index
    %6 = vector.load %arg4[%c0_5, %c0_6] : memref<8x64xf32, #tpu.memory_space<vmem>>, vector<8x64xf32>
    tpu.vector_store %arg4[%c0_5, %c0_6], %5 {strides = array<i32>} : memref<8x64xf32, #tpu.memory_space<vmem>>, vector<8x64xf32>,
    return
  }
  func.func @transform_0(%arg0: i32) -> (i32, i32) {
    %c0_i32 = arith.constant 0 : i32
    %c0_i32_0 = arith.constant 0 : i32
    return %arg0, %c0_i32 : i32, i32
  }
  func.func @transform_1(%arg0: i32) -> (i32, i32) {
    %c0_i32 = arith.constant 0 : i32
    %c0_i32_0 = arith.constant 0 : i32
    %c0_i32_1 = arith.constant 0 : i32
    return %c0_i32, %c0_i32_0 : i32, i32
  }
  func.func @transform_2(%arg0: i32) -> (i32, i32) {
    %c0_i32 = arith.constant 0 : i32
    %c0_i32_0 = arith.constant 0 : i32
    %c0_i32_1 = arith.constant 0 : i32
    return %c0_i32, %c0_i32_0 : i32, i32
  }
  func.func @transform_3(%arg0: i32) -> (i32, i32) {
    %c0_i32 = arith.constant 0 : i32
    %c0_i32_0 = arith.constant 0 : i32
    return %arg0, %c0_i32 : i32, i32
  }
}

</mosaic_0001>

<bundles_post_ra>
// kernel: tpu_custom_call.1
= control target key start
LH: loop header
LB: loop body
LE: loop exit
PB: predicated region body
PF: predicated region fallthrough
CT: control target
= control target key end

     0   :  { %8 = vsyncpa [#allocation3], 0  ;;  %s290_s0 = inlined_call_operand.hbm [shape: f32[8,64], index: 0, kind: input, shape index: {}]   ;;  %s291_s1 = inlined_call_operand.hbm [shape: f32[64,64], index: 1, kind: input, shape index: {}]   ;;  %s292_s2 = inlined_call_operand.vmem [shape: f32[1,64], index: 2, kind: input, shape index: {}]   ;;  %s293_s3 = inlined_call_operand.hbm [shape: f32[8,64], index: 3, kind: output, shape index: {}]  }
   0x1   :  { %9 = vsyncpa [#allocation6], 0 }
   0x2   :  { %10 = vsyncpa [#allocation4], 0  ;;  %s251_s12 = smov [#allocation2]   ;;  %s252_s14 = smov [#allocation5]  }
   0x3   :  { %s17_s13 = sshll.u32 %s251_s12, 4  ;;  %s26_s15 = sshll.u32 %s252_s14, 4  ;;  %s18_s13 = int_to_ptr.vmem [resolvable:$true] %s17_s13  ;;  %s27_s15 = int_to_ptr.vmem [resolvable:$true] %s26_s15 }
   0x4   :  { %s193_s16 = scalar_lea.vmem %s18_s13, 128  ;;  %p198_p1 = scmp.lt.s32.totalorder %s18_s13, %s18_s13 }
   0x5   :  { %p194_p0 = scmp.ne.s32.totalorder %s18_s13, %s193_s16  ;;  %p199_p2 = scmp.lt.s32.totalorder %s193_s16, %s193_s16 }
   0x7   :  { %p200_p3 = por %p199_p2, %p198_p1 }
   0x9   :  { %p201_p4 = pnand %p200_p3, %p194_p0 }
   0xb   :  { %204 = shalt.err (!%p201_p4)
}
   0xc   :  { %20 = dma.hbm_to_vmem [thread:$0]  %s290_s0, 128, %s18_s13, [#allocation3]  }
   0xd   :  { %s213_s19 = scalar_lea.vmem %s27_s15, 1024  ;;  %p218_p6 = scmp.lt.s32.totalorder %s27_s15, %s27_s15 }
   0xe   :  { %p214_p5 = scmp.ne.s32.totalorder %s27_s15, %s213_s19  ;;  %p219_p7 = scmp.lt.s32.totalorder %s213_s19, %s213_s19 }
  0x10   :  { %p220_p8 = por %p219_p7, %p218_p6 }
  0x12   :  { %p221_p9 = pnand %p220_p8, %p214_p5 }
  0x14   :  { %224 = shalt.err (!%p221_p9)
}
  0x15   :  { %s253_s20 = smov 128   ;;  %s254_s21 = smov 8  }
  0x16   :  { %32 = dma.hbm_to_vmem [thread:$0]  %s291_s1, 1024, %s27_s15, [#allocation6], %s253_s20, %s253_s20, %s254_s21  }
  0x17   :  { %245 = dma.done.wait [#allocation3], 128  }
  0x18   :  { %246 = vsyncadd [#allocation3], 4294967168 }
  0x19   :  { %247 = dma.done.wait [#allocation6], 1024  }
  0x1a   :  { %248 = vsyncadd [#allocation6], 4294966272  ;;  %v255_v0 = vmov 0.0   ;;  %vm256_vm0 = vmmov 0   ;;  %v49_v1 = vld [vmem:[#allocation5 + $0x38] sm:$0xff]  ;;  %v48_v2 = vld [vmem:[#allocation5 + $0x30] sm:$0xff] }
  0x1b   :  { %159 = vmatprep.subr.mxu0 %v255_v0  ;;  %175 = vmatprep.mubr.msk.f32.mxu0 %vm256_vm0, %v255_v0  ;;  %v47_v3 = vld [vmem:[#allocation5 + $0x28] sm:$0xff]  ;;  %v46_v4 = vld [vmem:[#allocation5 + $0x20] sm:$0xff]  ;;  %v45_v5 = vld [vmem:[#allocation5 + $0x18] sm:$0xff]  ;;  %vm57_vm1 = vcmask 523264   ;;  %s257_s24 = smov [#allocation7]  }
  0x1c   :  { %160 = vmatpush3.msra.mxu0 %v49_v1  ;;  %v44_v6 = vld [vmem:[#allocation5 + $0x10] sm:$0xff]  ;;  %v43_v7 = vld [vmem:[#allocation5 + $0x8] sm:$0xff]  ;;  %v42_v8 = vld [vmem:[#allocation5] sm:$0xff]  ;;  %s138_s25 = sshll.u32 %s257_s24, 4  ;;  %s139_s25 = int_to_ptr.vmem [resolvable:$true] %s138_s25 }
  0x1d   :  { %161 = vmatprep.subr.mxu0 %v255_v0  ;;  %v41_v9 = vld [vmem:[#allocation2] sm:$0xff]  ;;  %s225_s26 = scalar_lea.vmem %s139_s25, 128  ;;  %p230_p11 = scmp.lt.s32.totalorder %s139_s25, %s139_s25 }
  0x1e   :  { %162 = vmatpush3.msra.mxu0 %v48_v2  ;;  %v148_v10 = vld [vmem:[%s292_s2] ss:$0 sm:$0xff]  ;;  %p226_p10 = scmp.ne.s32.totalorder %s139_s25, %s225_s26  ;;  %p231_p12 = scmp.lt.s32.totalorder %s225_s26, %s225_s26 }
  0x1f   :  { %163 = vmatprep.subr.mxu0 %v255_v0 }
  0x20   :  { %164 = vmatpush3.msra.mxu0 %v47_v3  ;;  %p232_p13 = por %p231_p12, %p230_p11 }
  0x21   :  { %165 = vmatprep.subr.mxu0 %v255_v0 }
  0x22   :  { %166 = vmatpush3.msra.mxu0 %v46_v4  ;;  %p233_p0 = pnand %p232_p13, %p226_p10 }
  0x23   :  { %167 = vmatprep.subr.mxu0 %v255_v0 }
  0x24   :  { %168 = vmatpush3.msra.mxu0 %v45_v5 }
  0x25   :  { %169 = vmatprep.subr.mxu0 %v255_v0 }
  0x26   :  { %170 = vmatpush3.msra.mxu0 %v44_v6 }
  0x27   :  { %171 = vmatprep.subr.mxu0 %v255_v0 }
  0x28   :  { %172 = vmatpush3.msra.mxu0 %v43_v7 }
  0x29   :  { %173 = vmatprep.subr.mxu0 %v255_v0 }
  0x2a   :  { %174 = vmatpush3.msra.mxu0 %v42_v8 }
  0x2b   :  { %176 = vmatmul.mubr.msk.f32.vlgmr.msra.gmra.mxu0 %vm57_vm1, %v41_v9 }
  0xeb   :  { %v127_v11 = vpop.f32.mrf.mxu0 }
  0xec   :  { %v128_v12 = vadd.f32 %v148_v10, %v127_v11 }
  0xed   :  { %v177_v13 = vpop.f32.mrf.mxu0 }
  0xee   :  { %131 = vst.msk [vmem:[#allocation7] sm:$0xff] %vm57_vm1, %v128_v12 }
  0xef   :  { %236 = shalt.err (!%p233_p0)
}
  0xf0   :  { %141 = dma.vmem_to_hbm [thread:$0]  %s139_s25, 128, %s293_s3, [#allocation4]  }
  0xf1   :  { %249 = dma.done.wait [#allocation4], 128  }
  0xf2   :  { %250 = vsyncadd [#allocation4], 4294967168 }
  0xf3   :  { %145 = vsyncpa [#allocation3], 1 }
  0xf4   :  { %146 = vsyncpa [#allocation6], 1 }
  0xf5   :  { %147 = vsyncpa [#allocation4], 1 }

</bundles_post_ra>
